<compile_context>
chip_gen: v6e
topology: v6e:2x2x1
jax: 0.10.0
libtpu: 0.0.40
codegen_flags: <defaults>
</compile_context>

<pallas_src>
import math
from functools import partial

import jax
import jax.numpy as jnp
from jax.experimental import pallas as pl
from jax.experimental.pallas import tpu as pltpu


# ------------------------------ Pallas kernel -------------------------------

def _mha_kernel(q_ref, k_ref, v_ref, m_ref,
                wq_ref, bq_ref, wk_ref, bk_ref, wv_ref, bv_ref,
                wo_ref, bo_ref, o_ref, *, h):
    # Blocks: q (Sq, D), k/v (Sk, D), mask (Mq, Sk) with Mq in {1, Sq},
    # weights (D, D) in x@W orientation, biases (1, D).
    # NOTE: 1/sqrt(d_k) is already folded into wq/bq at prep time.
    xq = q_ref[...]
    xk = k_ref[...]
    xv = v_ref[...]

    # Q/K/V projections (MXU, f32 accumulation).
    q = jnp.dot(xq, wq_ref[...], preferred_element_type=jnp.float32) + bq_ref[...]
    k = jnp.dot(xk, wk_ref[...], preferred_element_type=jnp.float32) + bk_ref[...]
    v = jnp.dot(xv, wv_ref[...], preferred_element_type=jnp.float32) + bv_ref[...]

    masked = (m_ref[...] == 0)                      # (Mq, Sk), broadcast below
    d_model = q.shape[-1]
    dk = d_model // h

    # Per-head attention on static lane slices of the (S, D) projections.
    ctx_heads = []
    for hh in range(h):
        sl = slice(hh * dk, (hh + 1) * dk)
        qh = q[:, sl]                               # (Sq, dk)
        kh = k[:, sl]                               # (Sk, dk)
        vh = v[:, sl]                               # (Sk, dk)

        # scores = qh @ kh^T   (scale already applied via W_q / b_q)
        s = jax.lax.dot_general(qh, kh, (((1,), (1,)), ((), ())),
                                preferred_element_type=jnp.float32)   # (Sq, Sk)
        s = jnp.where(masked, -1e9, s)              # masked_fill(mask == 0, -1e9)
        s = s - jnp.max(s, axis=-1, keepdims=True)
        p = jnp.exp(s)
        inv = pl.reciprocal(jnp.sum(p, axis=-1, keepdims=True), approx=True)
        p = p * inv                                 # softmax(dim=-1)

        ctx_heads.append(
            jnp.dot(p.astype(v.dtype), vh, preferred_element_type=jnp.float32))

    ctx = jnp.concatenate(ctx_heads, axis=-1)       # (Sq, D), lane-dense

    # Fused output projection W_o + bias; lane-dense (Sq, D) store.
    out = jnp.dot(ctx, wo_ref[...], preferred_element_type=jnp.float32) + bo_ref[...]
    o_ref[...] = out.astype(o_ref.dtype)


# ------------------------------ thin wrapper --------------------------------

def prepare_params(params_pt, *, h):
    """One-time prep (outside jit): nn.Linear weights (d_out, d_in) ->
    (d_in, d_out), biases -> (1, d_out), and the 1/sqrt(d_k) attention scale
    folded into W_q / b_q, so the kernel never transposes or scales per call."""
    wq, bq, wk, bk, wv, bv, wo, bo = params_pt
    d_model = jnp.asarray(wq).shape[0]
    assert d_model % h == 0
    scale = 1.0 / math.sqrt(d_model // h)
    t = lambda w: jnp.asarray(w, jnp.float32).T
    r = lambda b: jnp.asarray(b, jnp.float32).reshape(1, -1)
    return (t(wq) * scale, r(bq) * scale,
            t(wk), r(bk),
            t(wv), r(bv),
            t(wo), r(bo))


def multi_head_attention(query, key, value, mask, params, *, h):
    """Fused MultiHeadedAttention forward. params = prepare_params(pytorch_params, h=h)."""
    wq, bq, wk, bk, wv, bv, wo, bo = params
    B, Sq, D = query.shape
    Sk = key.shape[1]
    assert D % h == 0

    if mask is None:
        mask = jnp.ones((1, 1, Sk), jnp.int32)
    mask = mask.astype(jnp.int32)
    mB, Mq, Mk = mask.shape                      # Mq in {1, Sq}; mB in {1, B}
    assert mB in (1, B) and Mq in (1, Sq) and Mk == Sk

    # Mask block stays head-independent; batch-broadcast handled by index_map.
    mask_idx = (lambda b: (b, 0, 0)) if mB == B else (lambda b: (0, 0, 0))

    cost = pl.CostEstimate(
        flops=int(B * (2 * Sq * D * D            # Q proj
                       + 4 * Sk * D * D          # K,V proj
                       + 4 * Sq * Sk * D         # scores + p@v (all heads)
                       + 2 * Sq * D * D)),       # W_o proj
        transcendentals=int(B * h * Sq * Sk),
        bytes_accessed=int(4 * (2 * B * Sq * D + 2 * B * Sk * D
                                + 4 * D * D + 4 * D + mask.size)),
    )

    kernel = partial(_mha_kernel, h=h)

    # NOTE: for long sequences one would additionally tile Sq / Sk
    # (flash-style); at these block sizes a per-batch block is VMEM-trivial.
    return pl.pallas_call(
        kernel,
        out_shape=jax.ShapeDtypeStruct((B, Sq, D), query.dtype),
        grid=(B,),
        in_specs=[
            pl.BlockSpec((None, Sq, D), lambda b: (b, 0, 0)),   # query
            pl.BlockSpec((None, Sk, D), lambda b: (b, 0, 0)),   # key
            pl.BlockSpec((None, Sk, D), lambda b: (b, 0, 0)),   # value
            pl.BlockSpec((None, Mq, Mk), mask_idx),             # mask
            pl.BlockSpec((D, D), lambda b: (0, 0)),             # W_q (resident)
            pl.BlockSpec((1, D), lambda b: (0, 0)),             # b_q
            pl.BlockSpec((D, D), lambda b: (0, 0)),             # W_k
            pl.BlockSpec((1, D), lambda b: (0, 0)),             # b_k
            pl.BlockSpec((D, D), lambda b: (0, 0)),             # W_v
            pl.BlockSpec((1, D), lambda b: (0, 0)),             # b_v
            pl.BlockSpec((D, D), lambda b: (0, 0)),             # W_o
            pl.BlockSpec((1, D), lambda b: (0, 0)),             # b_o
        ],
        out_specs=pl.BlockSpec((None, Sq, D), lambda b: (b, 0, 0)),
        compiler_params=pltpu.CompilerParams(
            dimension_semantics=("parallel",),
            vmem_limit_bytes=32 * 1024 * 1024,
        ),
        cost_estimate=cost,
    )(query, key, value, mask, wq, bq, wk, bk, wv, bv, wo, bo)


# ---------------------------- pure-JAX reference ----------------------------

def _ref_mha(params_pt, query, key, value, mask, *, h):
    wq, bq, wk, bk, wv, bv, wo, bo = params_pt          # PyTorch (d_out, d_in)
    lin = lambda x, w, b: x @ w.T + b
    B, Sq, D = query.shape
    Sk = key.shape[1]
    dk = D // h
    Q = lin(query, wq, bq).reshape(B, Sq, h, dk).transpose(0, 2, 1, 3)
    K = lin(key, wk, bk).reshape(B, Sk, h, dk).transpose(0, 2, 1, 3)
    V = lin(value, wv, bv).reshape(B, Sk, h, dk).transpose(0, 2, 1, 3)
    s = jnp.einsum("bhqd,bhkd->bhqk", Q, K) / math.sqrt(dk)
    m = mask[:, None, :, :]                             # unsqueeze(1)
    s = jnp.where(m == 0, -1e9, s)
    a = jax.nn.softmax(s, axis=-1)
    o = jnp.einsum("bhqk,bhkd->bhqd", a, V).transpose(0, 2, 1, 3).reshape(B, Sq, D)
    return lin(o, wo, bo)


# ---------------------------------- main -------------------------------------

def _dense(key, dout, din, scale=0.05):
    k1, k2 = jax.random.split(key)
    w = scale * jax.random.normal(k1, (dout, din), jnp.float32)
    b = scale * jax.random.normal(k2, (dout,), jnp.float32)
    return w, b


def _mha_params(key, d):
    ks = jax.random.split(key, 4)
    p = []
    for k in ks:
        w, b = _dense(k, d, d)
        p += [w, b]
    return tuple(p)   # (wq, bq, wk, bk, wv, bv, wo, bo) in PyTorch layout


if __name__ == "__main__":
    B, S_TGT, S_SRC, D, H = 2, 8, 16, 32, 4

    root = jax.random.PRNGKey(0)
    k_x, k_m, k_p1, k_p2 = jax.random.split(root, 4)

    self_params_pt = _mha_params(k_p1, D)     # PyTorch nn.Linear layout
    cross_params_pt = _mha_params(k_p2, D)
    self_params = prepare_params(self_params_pt, h=H)     # one-time transpose + scale fold
    cross_params = prepare_params(cross_params_pt, h=H)

    x = jax.random.normal(k_x, (B, S_TGT, D), jnp.float32)
    memory = jax.random.normal(k_m, (B, S_SRC, D), jnp.float32)

    tgt_mask = jnp.tril(jnp.ones((S_TGT, S_TGT), jnp.int32))[None]   # (1, Sq, Sq) causal
    src_mask = jnp.ones((B, 1, S_SRC), jnp.int32)                     # (B, 1, Ssrc) padding

    fwd = jax.jit(partial(multi_head_attention, h=H))

    # Self-attention (query = key = value = x, causal mask).
    out_self = fwd(x, x, x, tgt_mask, self_params)
    # Cross-attention (key/value = memory with a different sequence length).
    out_cross = fwd(x, memory, memory, src_mask, cross_params)
    jax.block_until_ready((out_self, out_cross))

    ref_self = _ref_mha(self_params_pt, x, x, x, tgt_mask, h=H)
    ref_cross = _ref_mha(cross_params_pt, x, memory, memory, src_mask, h=H)

    assert out_self.shape == (B, S_TGT, D)
    assert out_cross.shape == (B, S_TGT, D)
    err_s = float(jnp.max(jnp.abs(out_self - ref_self)))
    err_c = float(jnp.max(jnp.abs(out_cross - ref_cross)))
    assert jnp.allclose(out_self, ref_self, rtol=2e-3, atol=2e-3), err_s
    assert jnp.allclose(out_cross, ref_cross, rtol=2e-3, atol=2e-3), err_c

    print("KERNEL_OK")
</pallas_src>

<mosaic_0001>
module attributes {stable_mosaic.version = 11 : i64} {
  func.func @_mha_kernel(%arg0: i32, %arg1: memref<1x8x32xf32, #tpu.memory_space<vmem>>, %arg2: memref<1x8x32xf32, #tpu.memory_space<vmem>>, %arg3: memref<1x8x32xf32, #tpu.memory_space<vmem>>, %arg4: memref<1x8x8xi32, #tpu.memory_space<vmem>>, %arg5: memref<32x32xf32, #tpu.memory_space<vmem>>, %arg6: memref<1x32xf32, #tpu.memory_space<vmem>>, %arg7: memref<32x32xf32, #tpu.memory_space<vmem>>, %arg8: memref<1x32xf32, #tpu.memory_space<vmem>>, %arg9: memref<32x32xf32, #tpu.memory_space<vmem>>, %arg10: memref<1x32xf32, #tpu.memory_space<vmem>>, %arg11: memref<32x32xf32, #tpu.memory_space<vmem>>, %arg12: memref<1x32xf32, #tpu.memory_space<vmem>>, %arg13: memref<1x8x32xf32, #tpu.memory_space<vmem>>) attributes {dimension_semantics = [#tpu.dimension_semantics<parallel>], iteration_bounds = array<i64: 2>, scalar_prefetch = 0 : i64, scratch_operands = 0 : i64, tpu.core_type = #tpu.core_type<tc>, window_params = [{transform_indices = @transform_0, window_bounds = array<i64: 1, 8, 32>}, {transform_indices = @transform_1, window_bounds = array<i64: 1, 8, 32>}, {transform_indices = @transform_2, window_bounds = array<i64: 1, 8, 32>}, {pipeline_mode = #tpu.pipeline_mode<synchronous>, transform_indices = @transform_3, window_bounds = array<i64: 1, 8, 8>}, {pipeline_mode = #tpu.pipeline_mode<synchronous>, transform_indices = @transform_4, window_bounds = array<i64: 32, 32>}, {pipeline_mode = #tpu.pipeline_mode<synchronous>, transform_indices = @transform_5, window_bounds = array<i64: 1, 32>}, {pipeline_mode = #tpu.pipeline_mode<synchronous>, transform_indices = @transform_6, window_bounds = array<i64: 32, 32>}, {pipeline_mode = #tpu.pipeline_mode<synchronous>, transform_indices = @transform_7, window_bounds = array<i64: 1, 32>}, {pipeline_mode = #tpu.pipeline_mode<synchronous>, transform_indices = @transform_8, window_bounds = array<i64: 32, 32>}, {pipeline_mode = #tpu.pipeline_mode<synchronous>, transform_indices = @transform_9, window_bounds = array<i64: 1, 32>}, {pipeline_mode = #tpu.pipeline_mode<synchronous>, transform_indices = @transform_10, window_bounds = array<i64: 32, 32>}, {pipeline_mode = #tpu.pipeline_mode<synchronous>, transform_indices = @transform_11, window_bounds = array<i64: 1, 32>}, {transform_indices = @transform_12, window_bounds = array<i64: 1, 8, 32>}]} {
    %c0 = arith.constant 0 : index
    %c0_0 = arith.constant 0 : index
    %c0_1 = arith.constant 0 : index
    %0 = vector.load %arg1[%c0, %c0_0, %c0_1] : memref<1x8x32xf32, #tpu.memory_space<vmem>>, vector<1x8x32xf32>
    %1 = vector.shape_cast %0 : vector<1x8x32xf32> to vector<8x32xf32>
    %c0_2 = arith.constant 0 : index
    %c0_3 = arith.constant 0 : index
    %c0_4 = arith.constant 0 : index
    %2 = vector.load %arg2[%c0_2, %c0_3, %c0_4] : memref<1x8x32xf32, #tpu.memory_space<vmem>>, vector<1x8x32xf32>
    %3 = vector.shape_cast %2 : vector<1x8x32xf32> to vector<8x32xf32>
    %c0_5 = arith.constant 0 : index
    %c0_6 = arith.constant 0 : index
    %c0_7 = arith.constant 0 : index
    %4 = vector.load %arg3[%c0_5, %c0_6, %c0_7] : memref<1x8x32xf32, #tpu.memory_space<vmem>>, vector<1x8x32xf32>
    %5 = vector.shape_cast %4 : vector<1x8x32xf32> to vector<8x32xf32>
    %c0_8 = arith.constant 0 : index
    %c0_9 = arith.constant 0 : index
    %6 = vector.load %arg5[%c0_8, %c0_9] : memref<32x32xf32, #tpu.memory_space<vmem>>, vector<32x32xf32>
    %cst = arith.constant dense<0.000000e+00> : vector<8x32xf32>
    %7 = tpu.matmul %1, %6, %cst {dimension_numbers = #tpu.dot_dimension_numbers<[1], [0], [0], [1], [0, 0, 1, 1], [], []>} : vector<8x32xf32>, vector<32x32xf32>, vector<8x32xf32> -> vector<8x32xf32>
    %c0_10 = arith.constant 0 : index
    %c0_11 = arith.constant 0 : index
    %8 = vector.load %arg6[%c0_10, %c0_11] : memref<1x32xf32, #tpu.memory_space<vmem>>, vector<1x32xf32>
    %9 = vector.broadcast %8 : vector<1x32xf32> to vector<8x32xf32>
    %10 = arith.addf %7, %9 : vector<8x32xf32>
    %c0_12 = arith.constant 0 : index
    %c0_13 = arith.constant 0 : index
    %11 = vector.load %arg7[%c0_12, %c0_13] : memref<32x32xf32, #tpu.memory_space<vmem>>, vector<32x32xf32>
    %cst_14 = arith.constant dense<0.000000e+00> : vector<8x32xf32>
    %12 = tpu.matmul %3, %11, %cst_14 {dimension_numbers = #tpu.dot_dimension_numbers<[1], [0], [0], [1], [0, 0, 1, 1], [], []>} : vector<8x32xf32>, vector<32x32xf32>, vector<8x32xf32> -> vector<8x32xf32>
    %c0_15 = arith.constant 0 : index
    %c0_16 = arith.constant 0 : index
    %13 = vector.load %arg8[%c0_15, %c0_16] : memref<1x32xf32, #tpu.memory_space<vmem>>, vector<1x32xf32>
    %14 = vector.broadcast %13 : vector<1x32xf32> to vector<8x32xf32>
    %15 = arith.addf %12, %14 : vector<8x32xf32>
    %c0_17 = arith.constant 0 : index
    %c0_18 = arith.constant 0 : index
    %16 = vector.load %arg9[%c0_17, %c0_18] : memref<32x32xf32, #tpu.memory_space<vmem>>, vector<32x32xf32>
    %cst_19 = arith.constant dense<0.000000e+00> : vector<8x32xf32>
    %17 = tpu.matmul %5, %16, %cst_19 {dimension_numbers = #tpu.dot_dimension_numbers<[1], [0], [0], [1], [0, 0, 1, 1], [], []>} : vector<8x32xf32>, vector<32x32xf32>, vector<8x32xf32> -> vector<8x32xf32>
    %c0_20 = arith.constant 0 : index
    %c0_21 = arith.constant 0 : index
    %18 = vector.load %arg10[%c0_20, %c0_21] : memref<1x32xf32, #tpu.memory_space<vmem>>, vector<1x32xf32>
    %19 = vector.broadcast %18 : vector<1x32xf32> to vector<8x32xf32>
    %20 = arith.addf %17, %19 : vector<8x32xf32>
    %c0_22 = arith.constant 0 : index
    %c0_23 = arith.constant 0 : index
    %c0_24 = arith.constant 0 : index
    %21 = vector.load %arg4[%c0_22, %c0_23, %c0_24] : memref<1x8x8xi32, #tpu.memory_space<vmem>>, vector<1x8x8xi32>
    %22 = vector.shape_cast %21 : vector<1x8x8xi32> to vector<8x8xi32>
    %c0_i32 = arith.constant 0 : i32
    %23 = vector.broadcast %c0_i32 : i32 to vector<8x8xi32>
    %24 = arith.cmpi eq, %22, %23 : vector<8x8xi32>
    %25 = vector.extract_strided_slice %10 {offsets = [0, 0], sizes = [8, 8], strides = [1, 1]} : vector<8x32xf32> to vector<8x8xf32>
    %26 = vector.extract_strided_slice %15 {offsets = [0, 0], sizes = [8, 8], strides = [1, 1]} : vector<8x32xf32> to vector<8x8xf32>
    %27 = vector.extract_strided_slice %20 {offsets = [0, 0], sizes = [8, 8], strides = [1, 1]} : vector<8x32xf32> to vector<8x8xf32>
    %cst_25 = arith.constant dense<0.000000e+00> : vector<8x8xf32>
    %28 = tpu.matmul %25, %26, %cst_25 {dimension_numbers = #tpu.dot_dimension_numbers<[1], [1], [0], [0], [0, 0, 1, 0], [], []>} : vector<8x8xf32>, vector<8x8xf32>, vector<8x8xf32> -> vector<8x8xf32>
    %cst_26 = arith.constant -1.000000e+09 : f32
    %29 = vector.broadcast %cst_26 : f32 to vector<8x8xf32>
    %30 = arith.select %24, %29, %28 : vector<8x8xi1>, vector<8x8xf32>
    %cst_27 = arith.constant dense<0xFF800000> : vector<8xf32>
    %31 = vector.multi_reduction <maximumf>, %30, %cst_27 [1] : vector<8x8xf32> to vector<8xf32>
    %32 = vector.shape_cast %31 : vector<8xf32> to vector<8x1xf32>
    %33 = vector.broadcast %32 : vector<8x1xf32> to vector<8x8xf32>
    %34 = arith.subf %30, %33 : vector<8x8xf32>
    %35 = math.exp %34 : vector<8x8xf32>
    %cst_28 = arith.constant dense<0.000000e+00> : vector<8xf32>
    %36 = vector.multi_reduction <add>, %35, %cst_28 [1] : vector<8x8xf32> to vector<8xf32>
    %37 = vector.shape_cast %36 : vector<8xf32> to vector<8x1xf32>
    %38 = tpu.reciprocal %37 {approx = true} : vector<8x1xf32> -> vector<8x1xf32>
    %39 = vector.broadcast %38 : vector<8x1xf32> to vector<8x8xf32>
    %40 = arith.mulf %35, %39 : vector<8x8xf32>
    %cst_29 = arith.constant dense<0.000000e+00> : vector<8x8xf32>
    %41 = tpu.matmul %40, %27, %cst_29 {dimension_numbers = #tpu.dot_dimension_numbers<[1], [0], [0], [1], [0, 0, 1, 1], [], []>} : vector<8x8xf32>, vector<8x8xf32>, vector<8x8xf32> -> vector<8x8xf32>
    %42 = vector.extract_strided_slice %10 {offsets = [0, 8], sizes = [8, 8], strides = [1, 1]} : vector<8x32xf32> to vector<8x8xf32>
    %43 = vector.extract_strided_slice %15 {offsets = [0, 8], sizes = [8, 8], strides = [1, 1]} : vector<8x32xf32> to vector<8x8xf32>
    %44 = vector.extract_strided_slice %20 {offsets = [0, 8], sizes = [8, 8], strides = [1, 1]} : vector<8x32xf32> to vector<8x8xf32>
    %cst_30 = arith.constant dense<0.000000e+00> : vector<8x8xf32>
    %45 = tpu.matmul %42, %43, %cst_30 {dimension_numbers = #tpu.dot_dimension_numbers<[1], [1], [0], [0], [0, 0, 1, 0], [], []>} : vector<8x8xf32>, vector<8x8xf32>, vector<8x8xf32> -> vector<8x8xf32>
    %cst_31 = arith.constant -1.000000e+09 : f32
    %46 = vector.broadcast %cst_31 : f32 to vector<8x8xf32>
    %47 = arith.select %24, %46, %45 : vector<8x8xi1>, vector<8x8xf32>
    %cst_32 = arith.constant dense<0xFF800000> : vector<8xf32>
    %48 = vector.multi_reduction <maximumf>, %47, %cst_32 [1] : vector<8x8xf32> to vector<8xf32>
    %49 = vector.shape_cast %48 : vector<8xf32> to vector<8x1xf32>
    %50 = vector.broadcast %49 : vector<8x1xf32> to vector<8x8xf32>
    %51 = arith.subf %47, %50 : vector<8x8xf32>
    %52 = math.exp %51 : vector<8x8xf32>
    %cst_33 = arith.constant dense<0.000000e+00> : vector<8xf32>
    %53 = vector.multi_reduction <add>, %52, %cst_33 [1] : vector<8x8xf32> to vector<8xf32>
    %54 = vector.shape_cast %53 : vector<8xf32> to vector<8x1xf32>
    %55 = tpu.reciprocal %54 {approx = true} : vector<8x1xf32> -> vector<8x1xf32>
    %56 = vector.broadcast %55 : vector<8x1xf32> to vector<8x8xf32>
    %57 = arith.mulf %52, %56 : vector<8x8xf32>
    %cst_34 = arith.constant dense<0.000000e+00> : vector<8x8xf32>
    %58 = tpu.matmul %57, %44, %cst_34 {dimension_numbers = #tpu.dot_dimension_numbers<[1], [0], [0], [1], [0, 0, 1, 1], [], []>} : vector<8x8xf32>, vector<8x8xf32>, vector<8x8xf32> -> vector<8x8xf32>
    %59 = vector.extract_strided_slice %10 {offsets = [0, 16], sizes = [8, 8], strides = [1, 1]} : vector<8x32xf32> to vector<8x8xf32>
    %60 = vector.extract_strided_slice %15 {offsets = [0, 16], sizes = [8, 8], strides = [1, 1]} : vector<8x32xf32> to vector<8x8xf32>
    %61 = vector.extract_strided_slice %20 {offsets = [0, 16], sizes = [8, 8], strides = [1, 1]} : vector<8x32xf32> to vector<8x8xf32>
    %cst_35 = arith.constant dense<0.000000e+00> : vector<8x8xf32>
    %62 = tpu.matmul %59, %60, %cst_35 {dimension_numbers = #tpu.dot_dimension_numbers<[1], [1], [0], [0], [0, 0, 1, 0], [], []>} : vector<8x8xf32>, vector<8x8xf32>, vector<8x8xf32> -> vector<8x8xf32>
    %cst_36 = arith.constant -1.000000e+09 : f32
    %63 = vector.broadcast %cst_36 : f32 to vector<8x8xf32>
    %64 = arith.select %24, %63, %62 : vector<8x8xi1>, vector<8x8xf32>
    %cst_37 = arith.constant dense<0xFF800000> : vector<8xf32>
    %65 = vector.multi_reduction <maximumf>, %64, %cst_37 [1] : vector<8x8xf32> to vector<8xf32>
    %66 = vector.shape_cast %65 : vector<8xf32> to vector<8x1xf32>
    %67 = vector.broadcast %66 : vector<8x1xf32> to vector<8x8xf32>
    %68 = arith.subf %64, %67 : vector<8x8xf32>
    %69 = math.exp %68 : vector<8x8xf32>
    %cst_38 = arith.constant dense<0.000000e+00> : vector<8xf32>
    %70 = vector.multi_reduction <add>, %69, %cst_38 [1] : vector<8x8xf32> to vector<8xf32>
    %71 = vector.shape_cast %70 : vector<8xf32> to vector<8x1xf32>
    %72 = tpu.reciprocal %71 {approx = true} : vector<8x1xf32> -> vector<8x1xf32>
    %73 = vector.broadcast %72 : vector<8x1xf32> to vector<8x8xf32>
    %74 = arith.mulf %69, %73 : vector<8x8xf32>
    %cst_39 = arith.constant dense<0.000000e+00> : vector<8x8xf32>
    %75 = tpu.matmul %74, %61, %cst_39 {dimension_numbers = #tpu.dot_dimension_numbers<[1], [0], [0], [1], [0, 0, 1, 1], [], []>} : vector<8x8xf32>, vector<8x8xf32>, vector<8x8xf32> -> vector<8x8xf32>
    %76 = vector.extract_strided_slice %10 {offsets = [0, 24], sizes = [8, 8], strides = [1, 1]} : vector<8x32xf32> to vector<8x8xf32>
    %77 = vector.extract_strided_slice %15 {offsets = [0, 24], sizes = [8, 8], strides = [1, 1]} : vector<8x32xf32> to vector<8x8xf32>
    %78 = vector.extract_strided_slice %20 {offsets = [0, 24], sizes = [8, 8], strides = [1, 1]} : vector<8x32xf32> to vector<8x8xf32>
    %cst_40 = arith.constant dense<0.000000e+00> : vector<8x8xf32>
    %79 = tpu.matmul %76, %77, %cst_40 {dimension_numbers = #tpu.dot_dimension_numbers<[1], [1], [0], [0], [0, 0, 1, 0], [], []>} : vector<8x8xf32>, vector<8x8xf32>, vector<8x8xf32> -> vector<8x8xf32>
    %cst_41 = arith.constant -1.000000e+09 : f32
    %80 = vector.broadcast %cst_41 : f32 to vector<8x8xf32>
    %81 = arith.select %24, %80, %79 : vector<8x8xi1>, vector<8x8xf32>
    %cst_42 = arith.constant dense<0xFF800000> : vector<8xf32>
    %82 = vector.multi_reduction <maximumf>, %81, %cst_42 [1] : vector<8x8xf32> to vector<8xf32>
    %83 = vector.shape_cast %82 : vector<8xf32> to vector<8x1xf32>
    %84 = vector.broadcast %83 : vector<8x1xf32> to vector<8x8xf32>
    %85 = arith.subf %81, %84 : vector<8x8xf32>
    %86 = math.exp %85 : vector<8x8xf32>
    %cst_43 = arith.constant dense<0.000000e+00> : vector<8xf32>
    %87 = vector.multi_reduction <add>, %86, %cst_43 [1] : vector<8x8xf32> to vector<8xf32>
    %88 = vector.shape_cast %87 : vector<8xf32> to vector<8x1xf32>
    %89 = tpu.reciprocal %88 {approx = true} : vector<8x1xf32> -> vector<8x1xf32>
    %90 = vector.broadcast %89 : vector<8x1xf32> to vector<8x8xf32>
    %91 = arith.mulf %86, %90 : vector<8x8xf32>
    %cst_44 = arith.constant dense<0.000000e+00> : vector<8x8xf32>
    %92 = tpu.matmul %91, %78, %cst_44 {dimension_numbers = #tpu.dot_dimension_numbers<[1], [0], [0], [1], [0, 0, 1, 1], [], []>} : vector<8x8xf32>, vector<8x8xf32>, vector<8x8xf32> -> vector<8x8xf32>
    %93 = tpu.concatenate %41, %58, %75, %92 in 1 : vector<8x8xf32>, vector<8x8xf32>, vector<8x8xf32>, vector<8x8xf32> -> vector<8x32xf32>
    %c0_45 = arith.constant 0 : index
    %c0_46 = arith.constant 0 : index
    %94 = vector.load %arg11[%c0_45, %c0_46] : memref<32x32xf32, #tpu.memory_space<vmem>>, vector<32x32xf32>
    %cst_47 = arith.constant dense<0.000000e+00> : vector<8x32xf32>
    %95 = tpu.matmul %93, %94, %cst_47 {dimension_numbers = #tpu.dot_dimension_numbers<[1], [0], [0], [1], [0, 0, 1, 1], [], []>} : vector<8x32xf32>, vector<32x32xf32>, vector<8x32xf32> -> vector<8x32xf32>
    %c0_48 = arith.constant 0 : index
    %c0_49 = arith.constant 0 : index
    %96 = vector.load %arg12[%c0_48, %c0_49] : memref<1x32xf32, #tpu.memory_space<vmem>>, vector<1x32xf32>
    %97 = vector.broadcast %96 : vector<1x32xf32> to vector<8x32xf32>
    %98 = arith.addf %95, %97 : vector<8x32xf32>
    %c0_50 = arith.constant 0 : index
    %c0_51 = arith.constant 0 : index
    %c0_52 = arith.constant 0 : index
    %99 = vector.load %arg13[%c0_50, %c0_51, %c0_52] : memref<1x8x32xf32, #tpu.memory_space<vmem>>, vector<1x8x32xf32>
    %100 = vector.shape_cast %99 : vector<1x8x32xf32> to vector<8x32xf32>
    %101 = vector.shape_cast %98 : vector<8x32xf32> to vector<1x8x32xf32>
    tpu.vector_store %arg13[%c0_50, %c0_51, %c0_52], %101 {strides = array<i32>} : memref<1x8x32xf32, #tpu.memory_space<vmem>>, vector<1x8x32xf32>,
    return
  }
  func.func @transform_0(%arg0: i32) -> (i32, i32, i32) {
    %c0_i32 = arith.constant 0 : i32
    %c0_i32_0 = arith.constant 0 : i32
    %c0_i32_1 = arith.constant 0 : i32
    return %arg0, %c0_i32, %c0_i32_0 : i32, i32, i32
  }
  func.func @transform_1(%arg0: i32) -> (i32, i32, i32) {
    %c0_i32 = arith.constant 0 : i32
    %c0_i32_0 = arith.constant 0 : i32
    %c0_i32_1 = arith.constant 0 : i32
    return %arg0, %c0_i32, %c0_i32_0 : i32, i32, i32
  }
  func.func @transform_2(%arg0: i32) -> (i32, i32, i32) {
    %c0_i32 = arith.constant 0 : i32
    %c0_i32_0 = arith.constant 0 : i32
    %c0_i32_1 = arith.constant 0 : i32
    return %arg0, %c0_i32, %c0_i32_0 : i32, i32, i32
  }
  func.func @transform_3(%arg0: i32) -> (i32, i32, i32) {
    %c0_i32 = arith.constant 0 : i32
    %c0_i32_0 = arith.constant 0 : i32
    %c0_i32_1 = arith.constant 0 : i32
    %c0_i32_2 = arith.constant 0 : i32
    return %c0_i32, %c0_i32_0, %c0_i32_1 : i32, i32, i32
  }
  func.func @transform_4(%arg0: i32) -> (i32, i32) {
    %c0_i32 = arith.constant 0 : i32
    %c0_i32_0 = arith.constant 0 : i32
    %c0_i32_1 = arith.constant 0 : i32
    return %c0_i32, %c0_i32_0 : i32, i32
  }
  func.func @transform_5(%arg0: i32) -> (i32, i32) {
    %c0_i32 = arith.constant 0 : i32
    %c0_i32_0 = arith.constant 0 : i32
    %c0_i32_1 = arith.constant 0 : i32
    return %c0_i32, %c0_i32_0 : i32, i32
  }
  func.func @transform_6(%arg0: i32) -> (i32, i32) {
    %c0_i32 = arith.constant 0 : i32
    %c0_i32_0 = arith.constant 0 : i32
    %c0_i32_1 = arith.constant 0 : i32
    return %c0_i32, %c0_i32_0 : i32, i32
  }
  func.func @transform_7(%arg0: i32) -> (i32, i32) {
    %c0_i32 = arith.constant 0 : i32
    %c0_i32_0 = arith.constant 0 : i32
    %c0_i32_1 = arith.constant 0 : i32
    return %c0_i32, %c0_i32_0 : i32, i32
  }
  func.func @transform_8(%arg0: i32) -> (i32, i32) {
    %c0_i32 = arith.constant 0 : i32
    %c0_i32_0 = arith.constant 0 : i32
    %c0_i32_1 = arith.constant 0 : i32
    return %c0_i32, %c0_i32_0 : i32, i32
  }
  func.func @transform_9(%arg0: i32) -> (i32, i32) {
    %c0_i32 = arith.constant 0 : i32
    %c0_i32_0 = arith.constant 0 : i32
    %c0_i32_1 = arith.constant 0 : i32
    return %c0_i32, %c0_i32_0 : i32, i32
  }
  func.func @transform_10(%arg0: i32) -> (i32, i32) {
    %c0_i32 = arith.constant 0 : i32
    %c0_i32_0 = arith.constant 0 : i32
    %c0_i32_1 = arith.constant 0 : i32
    return %c0_i32, %c0_i32_0 : i32, i32
  }
  func.func @transform_11(%arg0: i32) -> (i32, i32) {
    %c0_i32 = arith.constant 0 : i32
    %c0_i32_0 = arith.constant 0 : i32
    %c0_i32_1 = arith.constant 0 : i32
    return %c0_i32, %c0_i32_0 : i32, i32
  }
  func.func @transform_12(%arg0: i32) -> (i32, i32, i32) {
    %c0_i32 = arith.constant 0 : i32
    %c0_i32_0 = arith.constant 0 : i32
    %c0_i32_1 = arith.constant 0 : i32
    return %arg0, %c0_i32, %c0_i32_0 : i32, i32, i32
  }
}

</mosaic_0001>

<bundles_post_ra>
// kernel: multi_head_attention.1
= control target key start
LH: loop header
LB: loop body
LE: loop exit
PB: predicated region body
PF: predicated region fallthrough
CT: control target
= control target key end

     0   :  { %s2860_s0 = inlined_call_operand.hbm [shape: f32[2,8,32], index: 0, kind: input, shape index: {}]   ;;  %s2861_s1 = inlined_call_operand.hbm [shape: f32[2,8,32], index: 1, kind: input, shape index: {}]   ;;  %s2862_s2 = inlined_call_operand.hbm [shape: f32[2,8,32], index: 2, kind: input, shape index: {}]   ;;  %s2863_s3 = inlined_call_operand.hbm [shape: s32[1,8,8], index: 3, kind: input, shape index: {}]   ;;  %s2864_s4 = inlined_call_operand.hbm [shape: f32[32,32], index: 4, kind: input, shape index: {}]   ;;  %s2865_s5 = inlined_call_operand.vmem [shape: f32[1,32], index: 5, kind: input, shape index: {}]   ;;  %s2866_s6 = inlined_call_operand.hbm [shape: f32[32,32], index: 6, kind: input, shape index: {}]   ;;  %s2867_s7 = inlined_call_operand.vmem [shape: f32[1,32], index: 7, kind: input, shape index: {}]   ;;  %s2868_s8 = inlined_call_operand.hbm [shape: f32[32,32], index: 8, kind: input, shape index: {}]   ;;  %s2869_s9 = inlined_call_operand.vmem [shape: f32[1,32], index: 9, kind: input, shape index: {}]   ;;  %s2870_s10 = inlined_call_operand.hbm [shape: f32[32,32], index: 10, kind: input, shape index: {}]   ;;  %s2871_s11 = inlined_call_operand.vmem [shape: f32[1,32], index: 11, kind: input, shape index: {}]   ;;  %s2872_s12 = inlined_call_operand.hbm [shape: f32[2,8,32], index: 12, kind: output, shape index: {}]  }
   0x1   :  { %2896 = sst [smem:[#allocation29_spill]] %s2861_s1 }
   0x2   :  { %2897 = sst [smem:[#allocation30_spill]] %s2863_s3 }
   0x3   :  { %2898 = sst [smem:[#allocation31_spill]] %s2866_s6 }
   0x4   :  { %2899 = sst [smem:[#allocation32_spill]] %s2869_s9 }
   0x5   :  { %2900 = sst [smem:[#allocation33_spill]] %s2871_s11 }
   0x6   :  { %2901 = sst [smem:[#allocation34_spill]] %s2872_s12 }
   0x7   :  { %17 = vsyncpa [#allocation3], 0 }
   0x8   :  { %19 = vsyncpa [#allocation3 + $0x1], 0 }
   0x9   :  { %20 = vsyncpa [#allocation6], 0 }
   0xa   :  { %22 = vsyncpa [#allocation6 + $0x1], 0 }
   0xb   :  { %23 = vsyncpa [#allocation9], 0 }
   0xc   :  { %24 = vsyncpa [#allocation12], 0 }
   0xd   :  { %25 = vsyncpa [#allocation15], 0 }
   0xe   :  { %26 = vsyncpa [#allocation4], 0 }
   0xf   :  { %28 = vsyncpa [#allocation4 + $0x1], 0  ;;  %s2448_s21 = smov 0   ;;  %s2450_s22 = smov 0  }
  0x10   :  { %s2452_s23 = smov 0   ;;  %s2454_s24 = smov 0  }
  0x11 LB: > { %2902 = sst [smem:[#allocation23_spill]] %s2350_s21  ;;  %s2364_s25 = smov [#allocation8]   ;;  %s2362_s24 = sphi %s2454_s24, %s2944_s24   ;;  %s2358_s23 = sphi %s2452_s23, %s2948_s23   ;;  %s2354_s22 = sphi %s2450_s22, %s2947_s22   ;;  %s2350_s21 = sphi %s2448_s21, %s2946_s21  }
  0x12   : > { %2903 = sst [smem:[#allocation24_spill]] %s2362_s24  ;;  %s345_s26 = sshll.u32 %s2364_s25, 4  ;;  %s346_s26 = int_to_ptr.vmem [resolvable:$true] %s345_s26 }
  0x13   : > { %s2469_s27 = sadd.s32 4294967295, %s2362_s24   ;;  %p1768_p0 = scmp.ge.s32.totalorder %s2362_s24, 1 }
  0x14   : > { %p2873_p1 = scmp.eq.s32.totalorder %s2469_s27, 0  ;;  %p332_p2 = scmp.lt.s32.totalorder %s2362_s24, 3 }
  0x15   : > { %s2365_s29 = smov [#allocation11]   ;;  %s2079_s15 = scalar_lea.vmem %s346_s26, 128 }
  0x16   : > { %p2474_p3 = pnand %p1768_p0, %p332_p2  ;;  %s371_s30 = sshll.u32 %s2365_s29, 4  ;;  %s372_s30 = int_to_ptr.vmem [resolvable:$true] %s371_s30 }
  0x17   : > { %p2080_p8 = scmp.ne.s32.totalorder %s346_s26, %s2079_s15  ;;  %p2087_p11 = scmp.lt.s32.totalorder %s346_s26, %s346_s26 }
  0x18   : > { %s2904_s28 = scalar_select %p2474_p3, 1, 0 }
  0x19   : > { %p1963_p5 = pneg %p2474_p3  ;;  %p2088_p12 = scmp.lt.s32.totalorder %s2079_s15, %s2079_s15 }
  0x1b   : > { %p2483_p6 = pnand %p1963_p5, %p2873_p1  ;;  %p2089_p13 = por %p2088_p12, %p2087_p11 }
  0x1d   : > { %s2905_s13 = scalar_select %p2483_p6, 1, 0 }
  0x1e   : > { %p2489_p7 = pneg %p2483_p6 }
  0x20   : > { %s2906_s14 = scalar_select %p2489_p7, 1, 0 }
  0x21   : > { %p2082_p9 = pnand %p2080_p8, %p2489_p7 }
  0x23   : > { %p2083_p10 = pneg %p2082_p9 }
  0x25   : > { %p2090_p0 = pnand %p2089_p13, %p2083_p10 }
  0x27   : > { %2093 = shalt.err (!%p2090_p0)
}
  0x28   : > { %s2907_s3 = sld [smem:[#allocation30_spill]]  ;;  %s2105_s18 = scalar_lea.vmem %s372_s30, 512 }
  0x29   : > { %p2106_p2 = scmp.ne.s32.totalorder %s372_s30, %s2105_s18  ;;  %p2113_p1 = scmp.lt.s32.totalorder %s372_s30, %s372_s30 }
  0x2a   : > { %p2114_p8 = scmp.lt.s32.totalorder %s2105_s18, %s2105_s18 }
  0x2b   : > { %p2108_p5 = pnand %p2106_p2, %p2489_p7 }
  0x2c   : > { %p2115_p9 = por %p2114_p8, %p2113_p1 }
  0x2d   : > { %p2109_p4 = pneg %p2108_p5 }
  0x2e   : > { %1966 = dma.hbm_to_vmem [thread:$0]  (!%p2483_p6), %s2907_s3, 128, %s346_s26, [#allocation9]  }
  0x2f   : > { %p2116_p3 = pnand %p2115_p9, %p2109_p4 }
  0x31   : > { %2119 = shalt.err (!%p2116_p3)
}
  0x32   : > { %s2875_s19 = smov 128   ;;  %s2877_s20 = smov 8  }
  0x33   : > { %s2908_s6 = sld [smem:[#allocation31_spill]]  ;;  %s1767_s29 = sadd.s32 4294967294, %s2362_s24  }
  0x34   : > { %s2512_s15 = sadd.s32 1, %s2362_s24   ;;  %s41_s17 = sadd.s32 1, %s2358_s23 }
  0x35   : > { %2909 = sst [smem:[#allocation25_spill]] %s2512_s15  ;;  %s38_s16 = ssub.s32 %s2362_s24, %s2512_s15 }
  0x36   : > { %p39_p1 = scmp.eq.s32.totalorder %s38_s16, 0  ;;  %p48_p3 = scmp.ne.s32.totalorder %s2358_s23, %s2354_s22 }
  0x37   : > { %p49_p4 = scmp.eq.s32.totalorder %s2362_s24, 0  ;;  %p54_p10 = scmp.ne.s32.totalorder %s2354_s22, %s2350_s21 }
  0x38   : > { %s2523_s18 = scalar_select %p39_p1, %s2358_s23, %s41_s17  }
  0x39   : > { %1972 = dma.hbm_to_vmem [thread:$0]  (!%p2483_p6), %s2908_s6, 512, %s372_s30, [#allocation12], %s2875_s19, %s2875_s19, %s2877_s20  }
  0x3a   : > { %2910 = sst [smem:[#allocation26_spill]] %s2523_s18  ;;  %p50_p11 = por %p49_p4, %p48_p3 }
  0x3b   : > { %p2911_p12 = scmp.eq.s32.totalorder %s2469_s27, 0  ;;  %p319_p0 = scmp.eq.s32.totalorder %s2469_s27, 1 }
  0x3c   : > { %p325_p2 = scmp.eq.s32.totalorder %s1767_s29, 1  ;;  %p1998_p5 = scmp.lt.s32.totalorder %s2362_s24, 2 }
  0x3d   : > { %p2527_p13 = por %p2911_p12, %p54_p10  ;;  %s2879_s30 = sand.u32 1, %s2358_s23  }
  0x3e   : > { %p2534_p8 = por %p319_p0, %p48_p3  ;;  %p2538_p9 = por %p325_p2, %p54_p10 }
  0x3f   : > { %s2912_s25 = scalar_select %p2527_p13, 1, 0 }
  0x40   : > { %s2913_s26 = scalar_select %p2534_p8, 1, 0 }
  0x41   : > { %s2915_s16 = scalar_select %p2538_p9, 1, 0 }
  0x42   : > { %2914 = sst [smem:[#allocation27_spill]] %s2913_s26  ;;  %s2544_s17 = sshll.u32 %s2879_s30, 3 }
  0x43   : > { %2916 = sst [smem:[#allocation28_spill]] %s2915_s16  ;;  %s2547_s19 = sshll.u32 %s2362_s24, 7 }
  0x44   : > { %p2549_p1 = pnand %p1998_p5, %p50_p11  ;;  %s438_s29 = sand.u32 1, %s2362_s24  }
  0x45   : > { %s2918_s1 = sld [smem:[#allocation29_spill]]  ;;  %s442_s30 = scalar_lea.vmem [#allocation5], %s2544_s17 }
  0x46   : > { %s449_s15 = sshll.u32 %s442_s30, 4  ;;  %s2368_s16 = smov [#allocation10]   ;;  %s2561_s15 = int_to_ptr.vmem [resolvable:$true] %s449_s15 }
  0x47   : > { %s355_s21 = sshll.u32 %s2368_s16, 4  ;;  %s2563_s12 = scalar_lea.sflag [#allocation6], %s438_s29  ;;  %s356_s21 = int_to_ptr.vmem [resolvable:$true] %s355_s21 }
  0x48   : > { %p2569_p4 = pneg %p2549_p1 }
  0x4a   : > { %s2919_s24 = scalar_select %p2569_p4, 1, 0 }
  0x4b   : > { %s2558_s18 = scalar_lea.hbm %s2918_s1, %s2547_s19  ;;  %s2125_s30 = scalar_lea.hbm %s2918_s1, 256 }
  0x4c   : > { %s2120_s11 = scalar_lea.hbm %s2558_s18, 128  ;;  %p2126_p12 = scmp.lt.s32.totalorder %s2558_s18, %s2918_s1 }
  0x4d   : > { %p2121_p3 = scmp.ne.s32.totalorder %s2558_s18, %s2120_s11  ;;  %p2127_p0 = scmp.lt.s32.totalorder %s2125_s30, %s2120_s11 }
  0x4f   : > { %p2123_p10 = pnand %p2569_p4, %p2121_p3  ;;  %p2128_p2 = por %p2127_p0, %p2126_p12 }
  0x51   : > { %p2124_p11 = pneg %p2123_p10 }
  0x53   : > { %p2129_p5 = pnand %p2128_p2, %p2124_p11 }
  0x55   : > { %2132 = shalt.err (!%p2129_p5)
}
  0x56   : > { %s2133_s16 = scalar_lea.vmem %s2561_s15, 128  ;;  %s2369_s29 = smov [#allocation5]  }
  0x57   : > { %p2134_p9 = scmp.ne.s32.totalorder %s2561_s15, %s2133_s16  ;;  %s2138_s3 = sshll.u32 %s2369_s29, 4  ;;  %s2139_s3 = int_to_ptr.vmem [resolvable:$false] %s2138_s3 }
  0x58   : > { %s2140_s6 = scalar_lea.vmem %s2139_s3, 256  ;;  %p2141_p8 = scmp.lt.s32.totalorder %s2561_s15, %s2139_s3 }
  0x59   : > { %p2136_p3 = pnand %p2134_p9, %p2569_p4  ;;  %p2142_p13 = scmp.lt.s32.totalorder %s2140_s6, %s2133_s16 }
  0x5b   : > { %p2137_p10 = pneg %p2136_p3  ;;  %p2143_p6 = por %p2142_p13, %p2141_p8 }
  0x5d   : > { %p2144_p7 = pnand %p2143_p6, %p2137_p10 }
  0x5f   : > { %2147 = shalt.err (!%p2144_p7)
}
  0x60   : > { %1985 = dma.hbm_to_vmem [thread:$0]  (!%p2549_p1), %s2558_s18, 128, %s2561_s15, %s2563_s12  }
  0x61   : > { %s2159_s9 = scalar_lea.vmem %s356_s21, 512  ;;  %p2920_p11 = scmp.ne.s32.totalorder %s2906_s14, 0 }
  0x62   : > { %p2160_p9 = scmp.ne.s32.totalorder %s356_s21, %s2159_s9  ;;  %p2167_p2 = scmp.lt.s32.totalorder %s356_s21, %s356_s21 }
  0x63   : > { %p2168_p5 = scmp.lt.s32.totalorder %s2159_s9, %s2159_s9 }
  0x64   : > { %p2162_p12 = pnand %p2160_p9, %p2920_p11 }
  0x65   : > { %p2169_p3 = por %p2168_p5, %p2167_p2 }
  0x66   : > { %p2163_p0 = pneg %p2162_p12 }
  0x68   : > { %p2170_p4 = pnand %p2169_p3, %p2163_p0 }
  0x6a   : > { %2173 = shalt.err (!%p2170_p4)
}
  0x6b   : > { %p2921_p6 = scmp.ne.s32.totalorder %s2905_s13, 0  ;;  %s2922_s11 = smov 8  }
  0x6c   : > { %s2923_s26 = smov 128   ;;  %s2370_s15 = smov [#allocation13]  }
  0x6d   : > { %1969 = dma.hbm_to_vmem [thread:$0]  (!%p2921_p6), %s2864_s4, 512, %s356_s21, [#allocation9], %s2923_s26, %s2923_s26, %s2922_s11  }
  0x6e   : > { %s387_s18 = sshll.u32 %s2370_s15, 4  ;;  %s2371_s29 = smov [#allocation14]   ;;  %s388_s18 = int_to_ptr.vmem [resolvable:$true] %s387_s18 }
  0x6f   : > { %s403_s3 = sshll.u32 %s2371_s29, 4  ;;  %s2185_s6 = scalar_lea.vmem %s388_s18, 512  ;;  %s404_s3 = int_to_ptr.vmem [resolvable:$true] %s403_s3 }
  0x70   : > { %p2186_p7 = scmp.ne.s32.totalorder %s388_s18, %s2185_s6  ;;  %p2193_p4 = scmp.lt.s32.totalorder %s388_s18, %s388_s18 }
  0x71   : > { %p2194_p10 = scmp.lt.s32.totalorder %s2185_s6, %s2185_s6 }
  0x72   : > { %p2188_p13 = pnand %p2186_p7, %p2920_p11 }
  0x73   : > { %p2195_p9 = por %p2194_p10, %p2193_p4 }
  0x74   : > { %p2189_p8 = pneg %p2188_p13 }
  0x76   : > { %p2196_p12 = pnand %p2195_p9, %p2189_p8 }
  0x78   : > { %2199 = shalt.err (!%p2196_p12)
}
  0x79   : > { %1975 = dma.hbm_to_vmem [thread:$0]  (!%p2921_p6), %s2868_s8, 512, %s388_s18, [#allocation12], %s2923_s26, %s2923_s26, %s2922_s11  }
  0x7a   : > { %s2211_s30 = scalar_lea.vmem %s404_s3, 512  ;;  %p2219_p3 = scmp.lt.s32.totalorder %s404_s3, %s404_s3 }
  0x7b   : > { %p2212_p0 = scmp.ne.s32.totalorder %s404_s3, %s2211_s30  ;;  %p2220_p7 = scmp.lt.s32.totalorder %s2211_s30, %s2211_s30 }
  0x7d   : > { %p2214_p2 = pnand %p2212_p0, %p2920_p11  ;;  %p2221_p13 = por %p2220_p7, %p2219_p3 }
  0x7f   : > { %p2215_p5 = pneg %p2214_p2 }
  0x81   : > { %p2222_p8 = pnand %p2221_p13, %p2215_p5 }
  0x83   : > { %2225 = shalt.err (!%p2222_p8)
}
  0x84   : > { %1978 = dma.hbm_to_vmem [thread:$0]  (!%p2921_p6), %s2870_s10, 512, %s404_s3, [#allocation15], %s2923_s26, %s2923_s26, %s2922_s11  }
  0x85   : > { %s2626_s29 = scalar_lea.hbm %s2860_s0, %s2547_s19  ;;  %s424_s13 = scalar_lea.vmem [#allocation2], %s2544_s17 }
  0x86   : > { %s431_s6 = sshll.u32 %s424_s13, 4  ;;  %s2633_s30 = scalar_lea.hbm %s2862_s2, %s2547_s19  ;;  %s432_s6 = int_to_ptr.vmem [resolvable:$true] %s431_s6 }
  0x87   : > { %s2924_s16 = sand.u32 1, %s2358_s23   ;;  %s2226_s1 = scalar_lea.hbm %s2626_s29, 128 }
  0x88   : > { %s421_s15 = scalar_lea.sflag [#allocation3], %s2924_s16  ;;  %p2227_p11 = scmp.ne.s32.totalorder %s2626_s29, %s2226_s1 }
  0x89   : > { %p2925_p6 = scmp.ne.s32.totalorder %s2919_s24, 0  ;;  %s2231_s3 = scalar_lea.hbm %s2860_s0, 256 }
  0x8a   : > { %p2232_p9 = scmp.lt.s32.totalorder %s2626_s29, %s2860_s0  ;;  %p2233_p12 = scmp.lt.s32.totalorder %s2231_s3, %s2226_s1 }
  0x8b   : > { %p2229_p4 = pnand %p2227_p11, %p2925_p6 }
  0x8c   : > { %p2234_p0 = por %p2233_p12, %p2232_p9 }
  0x8d   : > { %p2230_p10 = pneg %p2229_p4 }
  0x8f   : > { %p2235_p2 = pnand %p2234_p0, %p2230_p10 }
  0x91   : > { %2238 = shalt.err (!%p2235_p2)
}
  0x92   : > { %s2239_s19 = scalar_lea.vmem %s432_s6, 128  ;;  %s2372_s13 = smov [#allocation2]  }
  0x93   : > { %p2240_p5 = scmp.ne.s32.totalorder %s432_s6, %s2239_s19  ;;  %s2244_s21 = sshll.u32 %s2372_s13, 4  ;;  %s2245_s21 = int_to_ptr.vmem [resolvable:$false] %s2244_s21 }
  0x94   : > { %s2246_s9 = scalar_lea.vmem %s2245_s21, 256  ;;  %p2247_p13 = scmp.lt.s32.totalorder %s432_s6, %s2245_s21 }
  0x95   : > { %p2242_p3 = pnand %p2240_p5, %p2925_p6  ;;  %p2248_p8 = scmp.lt.s32.totalorder %s2246_s9, %s2239_s19 }
  0x97   : > { %p2243_p7 = pneg %p2242_p3  ;;  %p2249_p11 = por %p2248_p8, %p2247_p13 }
  0x99   : > { %p2250_p4 = pnand %p2249_p11, %p2243_p7 }
  0x9b   : > { %2253 = shalt.err (!%p2250_p4)
}
  0x9c   : > { %1982 = dma.hbm_to_vmem [thread:$0]  (!%p2549_p1), %s2626_s29, 128, %s432_s6, %s421_s15  }
  0x9d   : > { %s460_s1 = scalar_lea.vmem [#allocation7], %s2544_s17  ;;  %s2254_s11 = scalar_lea.hbm %s2633_s30, 128 }
  0x9e   : > { %s467_s16 = sshll.u32 %s460_s1, 4  ;;  %p2255_p10 = scmp.ne.s32.totalorder %s2633_s30, %s2254_s11  ;;  %s468_s16 = int_to_ptr.vmem [resolvable:$true] %s467_s16 }
  0x9f   : > { %s2259_s14 = scalar_lea.hbm %s2862_s2, 256  ;;  %p2260_p0 = scmp.lt.s32.totalorder %s2633_s30, %s2862_s2 }
  0xa0   : > { %p2257_p9 = pnand %p2255_p10, %p2925_p6  ;;  %p2261_p2 = scmp.lt.s32.totalorder %s2259_s14, %s2254_s11 }
  0xa2   : > { %p2258_p12 = pneg %p2257_p9  ;;  %p2262_p5 = por %p2261_p2, %p2260_p0 }
  0xa4   : > { %p2263_p3 = pnand %p2262_p5, %p2258_p12 }
  0xa6   : > { %2266 = shalt.err (!%p2263_p3)
}
  0xa7   : > { %s2267_s17 = scalar_lea.vmem %s468_s16, 128  ;;  %s2373_s29 = smov [#allocation7]  }
  0xa8   : > { %p2268_p7 = scmp.ne.s32.totalorder %s468_s16, %s2267_s17  ;;  %s2272_s6 = sshll.u32 %s2373_s29, 4  ;;  %s2273_s6 = int_to_ptr.vmem [resolvable:$false] %s2272_s6 }
  0xa9   : > { %s2274_s15 = scalar_lea.vmem %s2273_s6, 256  ;;  %p2275_p11 = scmp.lt.s32.totalorder %s468_s16, %s2273_s6 }
  0xaa   : > { %p2270_p13 = pnand %p2268_p7, %p2925_p6  ;;  %p2276_p4 = scmp.lt.s32.totalorder %s2274_s15, %s2267_s17 }
  0xac   : > { %p2271_p8 = pneg %p2270_p13  ;;  %p2277_p10 = por %p2276_p4, %p2275_p11 }
  0xae   : > { %p2278_p9 = pnand %p2277_p10, %p2271_p8 }
  0xb0   : > { %2281 = shalt.err (!%p2278_p9)
}
  0xb1   : > { %1988 = dma.hbm_to_vmem [thread:$0]  (!%p2549_p1), %s2633_s30, 128, %s468_s16, %s2563_s12  }
  0xb2   : > { %p2926_p12 = scmp.ne.s32.totalorder %s2904_s28, 0 }
  0xb3   : > { %s2674_s24 = sand.u32 (!%p2926_p12), 1, %s2354_s22   ;;  %p2927_p6 = scmp.ne.s32.totalorder (!%p2926_p12), %s2912_s25, 0 }
  0xb4   : > { %476 = sbr.rel (%p2926_p12) target bundleno = 2005 (0x7d5), region = 68  ;;  %s2677_s13 = sshll.u32 (!%p2926_p12), %s2674_s24, 3 }
  0xb5   : > { %s479_s21 = scalar_lea.sflag (!%p2926_p12), [#allocation3], %s2674_s24  ;;  %s482_s9 = scalar_lea.vmem (!%p2926_p12), [#allocation2], %s2677_s13 }
  0xb9   : > { %2325 = dma.done.wait (%p2927_p6), %s479_s21, 128  }
  0xba   : > { %2327 = vsyncadd (%p2927_p6), %s479_s21, 4294967168  ;;  %s487_s12 = sand.u32 1, %s2469_s27   ;;  %s491_s20 = scalar_lea.vmem [#allocation5], %s2677_s13 }
  0xbb   : > { %s488_s28 = scalar_lea.sflag [#allocation6], %s487_s12 }
  0xbc   : > { %2329 = dma.done.wait (%p2927_p6), %s488_s28, 256  }
  0xbd   : > { %2331 = vsyncadd (%p2927_p6), %s488_s28, 4294967040  ;;  %s500_s30 = scalar_lea.vmem [#allocation7], %s2677_s13  ;;  %p2928_p1 = scmp.eq.s32.totalorder %s2469_s27, 0 }
  0xbf   : > { %2333 = dma.done.wait (%p2928_p1), [#allocation9], 640   ;;  %p2929_p0 = pmov %p2928_p1 }
  0xc1   : > { %2335 = vsyncadd (%p2929_p0), [#allocation9], 4294966656  ;;  %p2930_p2 = pmov %p2929_p0 }
  0xc2   : > { %p2931_p5 = pmov %p2929_p0 }
  0xc3   : > { %2337 = dma.done.wait (%p2930_p2), [#allocation12], 1024  }
  0xc4   : > { %2339 = vsyncadd (%p2931_p5), [#allocation12], 4294966272  ;;  %p2932_p3 = pmov %p2929_p0 }
  0xc5   : > { %p2933_p7 = pmov %p2929_p0 }
  0xc6   : > { %2341 = dma.done.wait (%p2932_p3), [#allocation15], 512  }
  0xc7   : > { %2343 = vsyncadd (%p2933_p7), [#allocation15], 4294966784  ;;  %v2374_v0 = vmov 0.0   ;;  %vm2375_vm0 = vmmov 0   ;;  %v662_v1 = vld [vmem:[#allocation11 + $0x18] sm:$0xff]  ;;  %v661_v3 = vld [vmem:[#allocation11 + $0x10] sm:$0xff] }
  0xc8   : > { %1862 = vmatprep.subr.mxu1 %v2374_v0  ;;  %1851 = vmatprep.subr.mxu0 %v2374_v0  ;;  %v577_v2 = vld [vmem:[#allocation10 + $0x18] sm:$0xff]  ;;  %v576_v4 = vld [vmem:[#allocation10 + $0x10] sm:$0xff]  ;;  %v660_v5 = vld [vmem:[#allocation11 + $0x8] sm:$0xff]  ;;  %vm585_vm1 = vcmask 261120   ;;  %vm829_vm2 = vcmask 64512   ;;  %s2376_s26 = smov 120  }
  0xc9   : > { %1870 = vmatprep.mubr.msk.f32.mxu1 %vm2375_vm0, %v2374_v0  ;;  %1859 = vmatprep.mubr.msk.f32.mxu0 %vm2375_vm0, %v2374_v0  ;;  %v575_v6 = vld [vmem:[#allocation10 + $0x8] sm:$0xff]  ;;  %v659_v7 = vld [vmem:[#allocation11] sm:$0xff]  ;;  %s2377_s3 = smov 112   ;;  %s2378_s14 = smov 104   ;;  %v746_v19 = vld [vmem:[#allocation13 + $0x18] sm:$0xff]  ;;  %vm1503_vm4 = vcmask 130048  }
  0xca   : > { %1863 = vmatpush3.msra.mxu1 %v662_v1  ;;  %1852 = vmatpush3.msra.mxu0 %v577_v2  ;;  %v574_v8 = vld [vmem:[#allocation10] sm:$0xff]  ;;  %v571_v10 = vld [vmem:[%s482_s9] sm:$0xff]  ;;  %v827_v24 = vld [vmem:[#allocation8] sm:$0xff]  ;;  %s2934_s17 = sld [smem:[#allocation32_spill]]  ;;  %s2379_s29 = smov 8   ;;  %vm1505_vm5 = vcmask 195584  }
  0xcb   : > { %1864 = vmatprep.subr.mxu1 %v2374_v0  ;;  %1853 = vmatprep.subr.mxu0 %v2374_v0  ;;  %v572_v9 = vld [vmem:[%s491_s20] sm:$0xff]  ;;  %v1793_v11 = vld [vmem:[%s2867_s7] ss:$0 sm:$0xff]  ;;  %v745_v20 = vld [vmem:[#allocation13 + $0x10] sm:$0xff]  ;;  %vm828_vm3 = vcmp.eq.s32.totalorder %v827_v24, 0  ;;  %s2380_s6 = smov 16  }
  0xcc   : > { %1865 = vmatpush3.msra.mxu1 %v661_v3  ;;  %1854 = vmatpush3.msra.mxu0 %v576_v4  ;;  %v1791_v12 = vld [vmem:[%s2865_s5] ss:$0 sm:$0xff]  ;;  %v743_v22 = vld [vmem:[#allocation13] sm:$0xff]  ;;  %s2381_s15 = smov 24   ;;  %s2935_s21 = sld [smem:[#allocation27_spill]] }
  0xcd   : > { %1866 = vmatprep.subr.mxu1 %v2374_v0  ;;  %1855 = vmatprep.subr.mxu0 %v2374_v0  ;;  %v744_v21 = vld [vmem:[#allocation13 + $0x8] sm:$0xff]  ;;  %s2936_s28 = sld [smem:[#allocation33_spill]]  ;;  %s1812_s20 = sshll.u32 %s2469_s27, 7 }
  0xce   : > { %1867 = vmatpush3.msra.mxu1 %v660_v5  ;;  %1856 = vmatpush3.msra.mxu0 %v575_v6  ;;  %v573_v23 = vld [vmem:[%s500_s30] sm:$0xff]  ;;  %s570_s30 = scalar_lea.vmem [#allocation16], %s2677_s13  ;;  %s2937_s11 = sld [smem:[#allocation34_spill]] }
  0xcf   : > { %1868 = vmatprep.subr.mxu1 %v2374_v0  ;;  %1857 = vmatprep.subr.mxu0 %v2374_v0  ;;  %s1606_s25 = sshll.u32 %s570_s30, 4  ;;  %s2382_s27 = smov [#allocation16]   ;;  %s1607_s25 = int_to_ptr.vmem [resolvable:$true] %s1606_s25 }
  0xd0   : > { %1869 = vmatpush3.msra.mxu1 %v659_v7  ;;  %1858 = vmatpush3.msra.mxu0 %v574_v8  ;;  %v1795_v34 = vld [vmem:[%s2934_s17] ss:$0 sm:$0xff]  ;;  %s2286_s13 = sshll.u32 %s2382_s27, 4  ;;  %s2287_s13 = int_to_ptr.vmem [resolvable:$false] %s2286_s13 }
  0xd1   : > { %1871 = vmatmul.mubr.msk.f32.vlgmr.msra.gmra.mxu1 %vm585_vm1, %v572_v9  ;;  %1860 = vmatmul.mubr.msk.f32.vlgmr.msra.gmra.mxu0 %vm585_vm1, %v571_v10  ;;  %s2288_s18 = scalar_lea.vmem %s2287_s13, 256  ;;  %p2289_p10 = scmp.lt.s32.totalorder %s1607_s25, %s2287_s13 }
  0xd2   : > { %1884 = vmatprep.subr.mxu1 %v2374_v0  ;;  %1886 = vmatprep.mubr.msk.f32.mxu1 %vm2375_vm0, %v2374_v0  ;;  %p2938_p8 = scmp.ne.s32.totalorder %s2935_s21, 0 }
  0xd3   : > { %1873 = vmatprep.subr.mxu0 %v2374_v0  ;;  %1881 = vmatprep.mubr.msk.f32.mxu0 %vm2375_vm0, %v2374_v0 }
  0xd4   : > { %1874 = vmatpush3.msra.mxu0 %v746_v19 }
  0xd5   : > { %1875 = vmatprep.subr.mxu0 %v2374_v0 }
  0xd6   : > { %1876 = vmatpush3.msra.mxu0 %v745_v20 }
  0xd7   : > { %1877 = vmatprep.subr.mxu0 %v2374_v0 }
  0xd8   : > { %1878 = vmatpush3.msra.mxu0 %v744_v21 }
  0xd9   : > { %1879 = vmatprep.subr.mxu0 %v2374_v0 }
  0xda   : > { %1880 = vmatpush3.msra.mxu0 %v743_v22 }
  0xdb   : > { %1882 = vmatmul.mubr.msk.f32.vlgmr.msra.gmra.mxu0 %vm585_vm1, %v573_v23  ;;  %1904 = vmatprep.subr.mxu0 %v2374_v0 }
  0xdc   : > { %1906 = vmatprep.mubr.msk.f32.mxu0 %vm2375_vm0, %v2374_v0 }
 0x191   : > { %v739_v13 = vpop.f32.mrf.mxu1  ;;  %v655_v14 = vpop.f32.mrf.mxu0 }
 0x192   : > { %v740_v15 = vadd.f32 %v1793_v11, %v739_v13  ;;  %v656_v16 = vadd.f32 %v1791_v12, %v655_v14 }
 0x193   : > { %v1872_v17 = vpop.f32.mrf.mxu1  ;;  %v1861_v18 = vpop.f32.mrf.mxu0 }
 0x194   : > { %993 = vrot.lane.b32.xlu1 %v740_v15, %s2376_s26  ;;  %1885 = vmatpush3.xpose.msk.msra.mxu1 %vm829_vm2, %v740_v15 }
 0x195   : > { %1889 = vmatprep.subr.mxu1 %v2374_v0 }
 0x197   : > { %1887 = vmatmul.mubr.msk.f32.vlgmr.msra.gmra.mxu1 %vm829_vm2, %v656_v16 }
 0x198   : > { %991 = vrot.lane.b32.xlu1 %v656_v16, %s2376_s26  ;;  %1891 = vmatprep.mubr.msk.f32.mxu1 %vm2375_vm0, %v2374_v0 }
 0x19b   : > { %v823_v35 = vpop.f32.mrf.mxu0 }
 0x19c   : > { %1158 = vrot.lane.b32.xlu1 %v656_v16, %s2377_s3  ;;  %v2759_v36 = vadd.f32 %v1795_v34, %v823_v35 }
 0x19d   : > { %v1883_v37 = vpop.f32.mrf.mxu0 }
 0x19e   : > { %1890 = vmatpush3.msra.mxu1 %v2759_v36 }
 0x19f   : > { %1894 = vmatprep.subr.mxu1 %v2374_v0 }
 0x1a0   : > { %1326 = vrot.lane.b32.xlu1 %v740_v15, %s2378_s14 }
 0x1a4   : > { %1324 = vrot.lane.b32.xlu1 %v656_v16, %s2378_s14 }
 0x206   : > { %v994_v38 = vpop.permute.xlu1 %993 }
 0x20a   : > { %v992_v39 = vpop.permute.xlu1 %991 }
 0x20e   : > { %v1159_v40 = vpop.permute.xlu1 %1158 }
 0x212   : > { %v1327_v43 = vpop.permute.xlu1 %1326 }
 0x216   : > { %v1325_v44 = vpop.permute.xlu1 %1324 }
 0x257   : > { %v902_v25 = vpop.f32.mrf.mxu1 }
 0x258   : > { %v906_v26 = vsel %vm828_vm3, -1e+09, %v902_v25  ;;  %v1510_v25 = vld [vmem:[#allocation14 + $0x18] sm:$0xff] }
 0x259   : > { %v1888_v27 = vpop.f32.mrf.mxu1  ;;  %v907_v28 = vsel %vm829_vm2, %v906_v26, -inf }
 0x25a   : > { %908 = vmax.xlane.f32.xlu0 %v907_v28  ;;  %v1508_v27 = vld [vmem:[#allocation14 + $0x8] sm:$0xff]  ;;  %v1507_v28 = vld [vmem:[#allocation14] sm:$0xff] }
 0x2e3   : > { %v909_v29 = vpop.xlane.xlu0 %908 }
 0x2e4   : > { %v910_v30 = vsub.f32 %v906_v26, %v909_v29  ;;  %v1509_v26 = vld [vmem:[#allocation14 + $0x10] sm:$0xff] }
 0x2e6   : > { %v911_v31 = vmul.f32 1.442695, %v910_v30 }
 0x2e8   : > { %2052 = vpow2.f32 %v911_v31 }
 0x2f5   : > { %v2053_v32 = vpop.eup %2052 }
 0x2f6   : > { %v913_v33 = vsel %vm829_vm2, %v2053_v32, 0.0 }
 0x2f7   : > { %914 = vadd.xlane.f32.xlu0 %v913_v33 }
 0x30d   : > { %1160 = vrot.lane.b32.xlu0 %v740_v15, %s2377_s3 }
 0x380   : > { %v915_v41 = vpop.xlane.xlu0 %914 }
 0x381   : > { %2054 = vrcp.f32 %v915_v41 }
 0x384   : > { %v1161_v42 = vpop.permute.xlu0 %1160 }
 0x385   : > { %1905 = vmatpush3.xpose.msk.msra.mxu0 %vm829_vm2, %v1161_v42 }
 0x386   : > { %1914 = vmatprep.subr.mxu0 %v2374_v0 }
 0x388   : > { %1907 = vmatmul.mubr.msk.f32.vlgmr.msra.gmra.mxu0 %vm829_vm2, %v1159_v40  ;;  %v1809_v40 = vld [vmem:[%s2936_s28] ss:$0 sm:$0xff] }
 0x389   : > { %1915 = vmatpush3.xpose.msk.msra.mxu0 %vm829_vm2, %v1327_v43  ;;  %1916 = vmatprep.mubr.msk.f32.mxu0 %vm2375_vm0, %v2374_v0 }
 0x38a   : > { %1924 = vmatprep.subr.mxu0 %v2374_v0 }
 0x38c   : > { %1917 = vmatmul.mubr.msk.f32.vlgmr.msra.gmra.mxu0 %vm829_vm2, %v1325_v44 }
 0x38d   : > { %1932 = vmatprep.mubr.msk.f32.mxu0 %vm2375_vm0, %v2374_v0  ;;  %1925 = vmatpush3.msra.mxu0 %v1510_v25 }
 0x38e   : > { %v2055_v45 = vpop.eup %2054  ;;  %1926 = vmatprep.subr.mxu0 %v2374_v0 }
 0x38f   : > { %v917_v46 = vmul.f32 %v2055_v45, %v2053_v32  ;;  %1927 = vmatpush3.msra.mxu0 %v1509_v26 }
 0x390   : > { %1928 = vmatprep.subr.mxu0 %v2374_v0 }
 0x391   : > { %1892 = vmatmul.mubr.msk.f32.vlgmr.msra.gmra.mxu1 %vm829_vm2, %v917_v46  ;;  %1929 = vmatpush3.msra.mxu0 %v1508_v27 }
 0x392   : > { %1895 = vmatpush3.xpose.msk.msra.mxu1 %vm829_vm2, %v994_v38  ;;  %1896 = vmatprep.mubr.msk.f32.mxu1 %vm2375_vm0, %v2374_v0 }
 0x393   : > { %1899 = vmatprep.subr.mxu1 %v2374_v0  ;;  %1930 = vmatprep.subr.mxu0 %v2374_v0 }
 0x394   : > { %1931 = vmatpush3.msra.mxu0 %v1507_v28 }
 0x395   : > { %1897 = vmatmul.mubr.msk.f32.vlgmr.msra.gmra.mxu1 %vm829_vm2, %v992_v39 }
 0x396   : > { %1901 = vmatprep.mubr.msk.f32.mxu1 %vm2375_vm0, %v2374_v0 }
 0x448   : > { %v1232_v47 = vpop.f32.mrf.mxu0 }
 0x449   : > { %v1236_v48 = vsel %vm828_vm3, -1e+09, %v1232_v47 }
 0x44a   : > { %v1908_v49 = vpop.f32.mrf.mxu0  ;;  %v1237_v50 = vsel %vm829_vm2, %v1236_v48, -inf }
 0x44b   : > { %1238 = vmax.xlane.f32.xlu0 %v1237_v50 }
 0x44c   : > { %v1398_v51 = vpop.f32.mrf.mxu0 }
 0x44d   : > { %v1402_v59 = vsel %vm828_vm3, -1e+09, %v1398_v51 }
 0x44e   : > { %v1918_v52 = vpop.f32.mrf.mxu0  ;;  %v1403_v60 = vsel %vm829_vm2, %v1402_v59, -inf }
 0x451   : > { %v2784_v53 = vpop.f32.mrf.mxu1 }
 0x453   : > { %v1893_v54 = vpop.f32.mrf.mxu1 }
 0x455   : > { %v1065_v55 = vpop.f32.mrf.mxu1 }
 0x456   : > { %v1069_v56 = vsel %vm828_vm3, -1e+09, %v1065_v55 }
 0x457   : > { %v1898_v57 = vpop.f32.mrf.mxu1  ;;  %v1070_v58 = vsel %vm829_vm2, %v1069_v56, -inf }
 0x458   : > { %1071 = vmax.xlane.f32.xlu1 %v1070_v58 }
 0x45c   : > { %1404 = vmax.xlane.f32.xlu1 %v1403_v60 }
 0x4d4   : > { %v1239_v61 = vpop.xlane.xlu0 %1238 }
 0x4d5   : > { %v1240_v62 = vsub.f32 %v1236_v48, %v1239_v61 }
 0x4d7   : > { %v1241_v63 = vmul.f32 1.442695, %v1240_v62 }
 0x4d9   : > { %2056 = vpow2.f32 %v1241_v63 }
 0x4e1   : > { %v1072_v1 = vpop.xlane.xlu1 %1071 }
 0x4e2   : > { %v1073_v9 = vsub.f32 %v1069_v56, %v1072_v1 }
 0x4e4   : > { %v1074_v10 = vmul.f32 1.442695, %v1073_v9 }
 0x4e5   : > { %v1405_v2 = vpop.xlane.xlu1 %1404 }
 0x4e6   : > { %v2057_v3 = vpop.eup %2056  ;;  %v1406_v4 = vsub.f32 %v1402_v59, %v1405_v2 }
 0x4e7   : > { %v1243_v5 = vsel %vm829_vm2, %v2057_v3, 0.0 }
 0x4e8   : > { %v1407_v6 = vmul.f32 1.442695, %v1406_v4  ;;  %1244 = vadd.xlane.f32.xlu0 %v1243_v5 }
 0x4ea   : > { %2058 = vpow2.f32 %v1407_v6 }
 0x4eb   : > { %2060 = vpow2.f32 %v1074_v10 }
 0x4f7   : > { %v2059_v7 = vpop.eup %2058 }
 0x4f8   : > { %v1409_v8 = vsel %vm829_vm2, %v2059_v7, 0.0  ;;  %v2061_v11 = vpop.eup %2060 }
 0x4f9   : > { %1410 = vadd.xlane.f32.xlu1 %v1409_v8  ;;  %v1076_v12 = vsel %vm829_vm2, %v2061_v11, 0.0 }
 0x4fe   : > { %1082 = vrot.lane.b32.xlu0 %v2759_v36, %s2376_s26  ;;  %s2822_s26 = scalar_lea.hbm %s2937_s11, %s1812_s20 }
 0x50a   : > { %1248 = vrot.lane.b32.xlu1 %v2759_v36, %s2377_s3  ;;  %s1593_s3 = scalar_lea.sflag [#allocation4], %s2674_s24 }
 0x52e   : > { %1077 = vadd.xlane.f32.xlu1 %v1076_v12 }
 0x53f   : > { %1414 = vrot.lane.b32.xlu1 %v2759_v36, %s2378_s14  ;;  %s2282_s14 = scalar_lea.vmem %s1607_s25, 128 }
 0x540   : > { %p2283_p13 = scmp.ne.s32.totalorder %s1607_s25, %s2282_s14  ;;  %p2290_p9 = scmp.lt.s32.totalorder %s2288_s18, %s2282_s14 }
 0x542   : > { %p2284_p11 = pnand %p2283_p13, %p2938_p8  ;;  %p2291_p12 = por %p2290_p9, %p2289_p10 }
 0x544   : > { %p2285_p4 = pneg %p2284_p11 }
 0x546   : > { %p2292_p6 = pnand %p2291_p12, %p2285_p4 }
 0x571   : > { %v1245_v13 = vpop.xlane.xlu0 %1244 }
 0x575   : > { %v1083_v14 = vpop.permute.xlu0 %1082 }
 0x576   : > { %1900 = vmatpush3.msra.mxu1 %v1083_v14 }
 0x577   : > { %1909 = vmatprep.subr.mxu1 %v2374_v0 }
 0x582   : > { %v1411_v15 = vpop.xlane.xlu1 %1410 }
 0x586   : > { %v1249_v16 = vpop.permute.xlu1 %1248 }
 0x5b7   : > { %v1078_v17 = vpop.xlane.xlu1 %1077 }
 0x5b8   : > { %2062 = vrcp.f32 %v1078_v17 }
 0x5b9   : > { %2064 = vrcp.f32 %v1245_v13 }
 0x5ba   : > { %2066 = vrcp.f32 %v1411_v15 }
 0x5bb   : > { %v1415_v23 = vpop.permute.xlu1 %1414 }
 0x5c5   : > { %v2063_v18 = vpop.eup %2062 }
 0x5c6   : > { %v1080_v19 = vmul.f32 %v2063_v18, %v2061_v11  ;;  %v2065_v20 = vpop.eup %2064 }
 0x5c7   : > { %v1247_v21 = vmul.f32 %v2065_v20, %v2057_v3  ;;  %v2067_v22 = vpop.eup %2066 }
 0x5c8   : > { %1902 = vmatmul.mubr.msk.f32.vlgmr.msra.gmra.mxu1 %vm829_vm2, %v1080_v19  ;;  %v1413_v24 = vmul.f32 %v2067_v22, %v2059_v7 }
 0x5c9   : > { %1910 = vmatpush3.msra.mxu1 %v1249_v16  ;;  %1911 = vmatprep.mubr.msk.f32.mxu1 %vm2375_vm0, %v2374_v0 }
 0x5ca   : > { %1919 = vmatprep.subr.mxu1 %v2374_v0 }
 0x5cc   : > { %1912 = vmatmul.mubr.msk.f32.vlgmr.msra.gmra.mxu1 %vm829_vm2, %v1247_v21 }
 0x5cd   : > { %1920 = vmatpush3.msra.mxu1 %v1415_v23  ;;  %1921 = vmatprep.mubr.msk.f32.mxu1 %vm2375_vm0, %v2374_v0 }
 0x5d0   : > { %1922 = vmatmul.mubr.msk.f32.vlgmr.msra.gmra.mxu1 %vm829_vm2, %v1413_v24 }
 0x688   : > { %v1154_v29 = vpop.f32.mrf.mxu1 }
 0x689   : > { %1491 = vrot.lane.b32.xlu0 %v1154_v29, %s2379_s29 }
 0x68a   : > { %v1903_v30 = vpop.f32.mrf.mxu1 }
 0x68c   : > { %v1320_v31 = vpop.f32.mrf.mxu1 }
 0x68d   : > { %1495 = vrot.lane.b32.xlu1 %v1320_v31, %s2380_s6 }
 0x68e   : > { %v1913_v32 = vpop.f32.mrf.mxu1 }
 0x690   : > { %v1486_v33 = vpop.f32.mrf.mxu1 }
 0x691   : > { %1499 = vrot.lane.b32.xlu0 %v1486_v33, %s2381_s15 }
 0x692   : > { %v1923_v34 = vpop.f32.mrf.mxu1 }
 0x6fb   : > { %v1492_v35 = vpop.permute.xlu0 %1491 }
 0x6fc   : > { %v1502_v0 = vsel %vm829_vm2, %v2784_v53, %v1492_v35 }
 0x6ff   : > { %v1496_v36 = vpop.permute.xlu1 %1495 }
 0x700   : > { %v1504_v37 = vsel %vm1503_vm4, %v1502_v0, %v1496_v36 }
 0x703   : > { %v1500_v38 = vpop.permute.xlu0 %1499 }
 0x704   : > { %v1506_v39 = vsel %vm1505_vm5, %v1504_v37, %v1500_v38 }
 0x705   : > { %1933 = vmatmul.mubr.msk.f32.vlgmr.msra.gmra.mxu0 %vm585_vm1, %v1506_v39 }
 0x7c5   : > { %v1587_v41 = vpop.f32.mrf.mxu0 }
 0x7c6   : > { %v1588_v42 = vadd.f32 %v1809_v40, %v1587_v41 }
 0x7c7   : > { %v1934_v43 = vpop.f32.mrf.mxu0 }
 0x7c8   : > { %1591 = vst.msk [vmem:[%s570_s30] sm:$0xff] %vm585_vm1, %v1588_v42 }
 0x7c9   : > { %2295 = shalt.err (!%p2292_p6)
}
 0x7ca   : > { %s2296_s19 = scalar_lea.hbm %s2822_s26, 128  ;;  %s2300_s29 = scalar_lea.hbm %s2937_s11, 256 }
 0x7cb   : > { %p2297_p1 = scmp.ne.s32.totalorder %s2822_s26, %s2296_s19  ;;  %p2301_p5 = scmp.lt.s32.totalorder %s2822_s26, %s2937_s11 }
 0x7cc   : > { %p2302_p3 = scmp.lt.s32.totalorder %s2300_s29, %s2296_s19 }
 0x7cd   : > { %p2298_p0 = pnand %p2297_p1, %p2938_p8 }
 0x7ce   : > { %p2303_p7 = por %p2302_p3, %p2301_p5 }
 0x7cf   : > { %p2299_p2 = pneg %p2298_p0 }
 0x7d1   : > { %p2304_p13 = pnand %p2303_p7, %p2299_p2 }
 0x7d3   : > { %2307 = shalt.err (!%p2304_p13)
}
 0x7d4   : > { %1961 = dma.vmem_to_hbm [thread:$0]  (%p2938_p8), %s1607_s25, 128, %s2822_s26, %s1593_s3  }
 0x7d5 PF: > { %s2939_s9 = sld [smem:[#allocation23_spill]] }
 0x7d6   : > { %s2940_s12 = sld [smem:[#allocation28_spill]] }
 0x7d7   : > { %s2941_s28 = sld [smem:[#allocation24_spill]] }
 0x7db   : > { %s1618_s20 = sand.u32 1, %s2939_s9  }
 0x7dc   : > { %p2942_p11 = scmp.ne.s32.totalorder %s2940_s12, 0  ;;  %s1619_s30 = scalar_lea.sflag [#allocation4], %s1618_s20 }
 0x7dd   : > { %p2943_p4 = scmp.ge.s32.totalorder %s2941_s28, 2 }
 0x7df   : > { %p1990_p10 = pnand %p2943_p4, %p2942_p11 }
 0x7e1   : > { %p1991_p9 = pneg %p1990_p10 }
 0x7e3   : > { %2345 = dma.done.wait (%p1991_p9), %s1619_s30, 128  }
 0x7e4   : > { %2347 = vsyncadd (%p1991_p9), %s1619_s30, 4294967168  ;;  %s2944_s24 = sld [smem:[#allocation25_spill]]  ;;  %s2946_s21 = smov %s2354_s22 }
 0x7e5   : > { %s2945_s1 = sld [smem:[#allocation26_spill]]  ;;  %s2947_s22 = smov %s2358_s23 }
 0x7ea   : > { %p31_p12 = scmp.ge.s32.totalorder %s2944_s24, 4  }
 0x7eb   : > { %s2948_s23 = smov %s2945_s1 }
 0x7ec   :  { %33 = sbr.rel (!%p31_p12) target bundleno = 17 (0x11), region = 157 }
 0x7f1   :  { %1624 = vsyncpa [#allocation3], 1 }
 0x7f2   :  { %1626 = vsyncpa [#allocation3 + $0x1], 1 }
 0x7f3   :  { %1627 = vsyncpa [#allocation6], 1 }
 0x7f4   :  { %1629 = vsyncpa [#allocation6 + $0x1], 1 }
 0x7f5   :  { %1630 = vsyncpa [#allocation9], 1 }
 0x7f6   :  { %1631 = vsyncpa [#allocation12], 1 }
 0x7f7   :  { %1632 = vsyncpa [#allocation15], 1 }
 0x7f8   :  { %1633 = vsyncpa [#allocation4], 1 }
 0x7f9   :  { %1635 = vsyncpa [#allocation4 + $0x1], 1 }

</bundles_post_ra>
